<compile_context>
chip_gen: v5e
topology: v5e:2x2
jax: 0.10.0
libtpu: 0.0.40
codegen_flags: <defaults>
</compile_context>

<pallas_src>
import functools

import jax
import jax.numpy as jnp
from jax.experimental import pallas as pl
from jax.experimental.pallas import tpu as pltpu


_LANE = 128
_SUBLANE = 8
_TILE_CANDIDATES = (1024, 512, 256, 128, 64, 32, 16, 8)
_VALID_ACTIVATIONS = ("ReLU", "LeakyReLU", "Tanh", "Sigmoid", "GELU", "SiLU")


def _round_up(x, m):
    return ((x + m - 1) // m) * m


def _cdiv(a, b):
    return -(-a // b)


def _apply_activation(y, activation):
    if activation == "Tanh":
        return jnp.tanh(y)
    if activation == "ReLU":
        return jnp.maximum(y, 0.0)
    if activation == "LeakyReLU":
        return jnp.where(y >= 0.0, y, 0.01 * y)   # PyTorch default slope 0.01
    if activation == "Sigmoid":
        return jax.nn.sigmoid(y)
    if activation == "GELU":
        return jax.nn.gelu(y, approximate=False)  # PyTorch nn.GELU default = exact erf
    if activation == "SiLU":
        return y * jax.nn.sigmoid(y)
    raise ValueError(f"Invalid activation: {activation}")


def _vmem_capacity_bytes():
    try:
        return int(pltpu.get_tpu_info().vmem_capacity_bytes)
    except Exception:
        return 64 * 1024 * 1024   # assume the smallest (v7x per-TC) if query fails


def _num_tensorcores():
    # Only v7x has 2 TensorCores per chip; everything else is 1.
    try:
        kind = jax.devices()[0].device_kind.lower()
        if "v7" in kind or "7x" in kind:
            return 2
    except Exception:
        pass
    return 1


def _vmem_bytes(tb, pdims, wsize, weight_buffers):
    """Estimated VMEM footprint for a batch tile of `tb` rows."""
    n_layers = len(pdims) - 1
    # weights + biases (kept resident across the batch grid)
    wbytes = sum((pdims[l] + 1) * pdims[l + 1] * wsize for l in range(n_layers))
    # double-buffered streaming x / out tiles
    io = 2 * tb * (pdims[0] + pdims[-1]) * 4
    # live intermediate activations: producer + consumer at the widest boundary
    h = max(tb * (pdims[l] + pdims[l + 1]) * 4 for l in range(n_layers))
    return weight_buffers * wbytes + io + h


def _choose_batch_tile(B, max_tile, n_cores):
    tb_single = _round_up(B, _SUBLANE)
    if n_cores <= 1 and tb_single <= max_tile:
        return tb_single                          # 1 TC: one big step, no split
    min_steps = 2 if n_cores >= 2 else 1
    steps = max(_cdiv(tb_single, max_tile), min_steps)
    if n_cores >= 2 and steps % 2:
        steps += 1                                # balance the two v7x TensorCores
    return max(_SUBLANE, _round_up(_cdiv(B, steps), _SUBLANE))


# ----------------------------------------------------------------------------
# Fused Pallas kernel: whole MLP forward for one batch tile.
# refs = (x_ref, w0, b0, w1, b1, ..., w_{L-1}, b_{L-1}, o_ref)
# ----------------------------------------------------------------------------
def _mlp_fused_kernel(*refs, activation, n_layers):
    x_ref = refs[0]
    o_ref = refs[-1]
    wb = refs[1:-1]

    h = x_ref[...].astype(jnp.float32)
    for l in range(n_layers):
        w = wb[2 * l][...]
        b = wb[2 * l + 1][...].astype(jnp.float32)
        h = jnp.dot(h, w, preferred_element_type=jnp.float32) + b
        if l < n_layers - 1:              # final layer has no activation
            h = _apply_activation(h, activation)
    o_ref[...] = h.astype(o_ref.dtype)


def mlp_forward_pallas(x, params, activation, *, weights_in_bf16=False):
    """Fused full-MLP forward: y = final(act(...act(x @ W0 + b0)...) @ WL + bL)."""
    B, Din = x.shape
    n_layers = len(params)
    assert params[0][0].shape[0] == Din
    dims = [Din] + [w.shape[1] for (w, _) in params]

    # Hidden/output feature dims -> lane-dense multiples of 128.  x's feature
    # dim (and W0's rows) stay UNPADDED: block last dim == full array dim
    # satisfies the (8,128) rule and avoids a padded-x HBM round trip.
    pdims = [Din] + [_round_up(d, _LANE) for d in dims[1:]]

    w_dtype = jnp.bfloat16 if weights_in_bf16 else jnp.float32
    wsize = 2 if weights_in_bf16 else 4

    padded_params = []
    for l, (w, b) in enumerate(params):
        wp = jnp.pad(w, ((0, pdims[l] - w.shape[0]), (0, pdims[l + 1] - w.shape[1])))
        bp = jnp.pad(b, (0, pdims[l + 1] - b.shape[0])).reshape(1, pdims[l + 1])
        padded_params.append((wp.astype(w_dtype), bp.astype(w_dtype)))

    # --- tile / VMEM sizing ---------------------------------------------------
    cap = _vmem_capacity_bytes()
    budget_cap = int(0.70 * cap)            # leave headroom for Mosaic scratch
    n_cores = _num_tensorcores()

    max_tile = None
    for t in _TILE_CANDIDATES:
        if _vmem_bytes(t, pdims, wsize, weight_buffers=1) <= budget_cap:
            max_tile = t
            break
    # TODO(synk): if even an 8-row tile does not fit (very wide layers), add
    # K/N reduction tiling over an extra grid axis with an f32 VMEM accumulator
    # (pl.when init/finalize) instead of keeping all weights resident.
    assert max_tile is not None, "MLP weights too large to keep resident in VMEM"

    tb = _choose_batch_tile(B, max_tile, n_cores)
    b_pad = _round_up(B, tb)               # pad batch to a multiple of the TILE
    grid = (b_pad // tb,)

    x_p = x if b_pad == B else jnp.pad(x, ((0, b_pad - B), (0, 0)))

    needed = _vmem_bytes(tb, pdims, wsize, weight_buffers=1)
    vmem_limit = int(min(int(0.75 * cap), max(needed + (8 << 20), 32 << 20)))
    compiler_params = pltpu.CompilerParams(
        dimension_semantics=("parallel",),
        vmem_limit_bytes=vmem_limit,
    )

    flat_inputs = [x_p]
    for wp, bp in padded_params:
        flat_inputs += [wp, bp]

    kernel = functools.partial(_mlp_fused_kernel,
                               activation=activation, n_layers=n_layers)

    def build_call(single_buffer_weights):
        wkw = {}
        if single_buffer_weights:
            # Grid-invariant weights/biases are fetched once; default
            # double-buffering would only waste VMEM.
            wkw = dict(pipeline_mode=pl.Buffered(1))
        in_specs = [pl.BlockSpec((tb, pdims[0]), lambda i: (i, 0))]
        for l in range(n_layers):
            in_specs.append(
                pl.BlockSpec((pdims[l], pdims[l + 1]), lambda i: (0, 0), **wkw))
            in_specs.append(
                pl.BlockSpec((1, pdims[l + 1]), lambda i: (0, 0), **wkw))
        out_spec = pl.BlockSpec((tb, pdims[-1]), lambda i: (i, 0))
        return pl.pallas_call(
            kernel,
            out_shape=jax.ShapeDtypeStruct((b_pad, pdims[-1]), x.dtype),
            grid_spec=pltpu.PrefetchScalarGridSpec(
                num_scalar_prefetch=0,
                grid=grid,
                in_specs=in_specs,
                out_specs=out_spec,
            ),
            compiler_params=compiler_params,
        )

    try:
        y_p = build_call(single_buffer_weights=True)(*flat_inputs)
    except Exception:
        # Fallback for JAX/Mosaic versions that reject Buffered(1) specs.
        y_p = build_call(single_buffer_weights=False)(*flat_inputs)

    return y_p[:B, :dims[-1]]


# ----------------------------------------------------------------------------
# MLP module (parameters created deterministically in-script)
# ----------------------------------------------------------------------------
class MLP:
    def __init__(self, input_dim=1, output_dim=1, hidden_layers=(100,),
                 activation="Tanh", key=None, dtype=jnp.float32,
                 weights_in_bf16=False):
        # PyTorch module's default 'tanh' matches none of its branches and
        # would leave self.activation unset — enforce a valid name up front.
        assert activation in _VALID_ACTIVATIONS, (
            f"Invalid activation {activation!r}! Options: {_VALID_ACTIVATIONS}")
        if key is None:
            key = jax.random.PRNGKey(0)
        self.activation = activation
        self.weights_in_bf16 = weights_in_bf16
        dims = [input_dim] + list(hidden_layers) + [output_dim]
        self.params = []
        for i in range(len(dims) - 1):
            key, kw, kb = jax.random.split(key, 3)
            bound = 1.0 / float(dims[i]) ** 0.5   # PyTorch nn.Linear-style init
            w = jax.random.uniform(kw, (dims[i], dims[i + 1]), dtype,
                                   minval=-bound, maxval=bound)
            b = jax.random.uniform(kb, (dims[i + 1],), dtype,
                                   minval=-bound, maxval=bound)
            self.params.append((w, b))

    def __call__(self, x):
        return mlp_forward_pallas(x, self.params, self.activation,
                                  weights_in_bf16=self.weights_in_bf16)

    def reference(self, x):
        # pure-JAX reference (applies the real activation for every option)
        for (w, b) in self.params[:-1]:
            x = _apply_activation(x @ w + b, self.activation)
        w, b = self.params[-1]
        return x @ w + b


if __name__ == "__main__":
    key = jax.random.PRNGKey(0)
    key, kx = jax.random.split(key)

    batch, input_dim, output_dim = 16, 4, 2
    hidden_layers = [32, 32]

    x = jax.random.normal(kx, (batch, input_dim), jnp.float32)

    mlp = MLP(input_dim=input_dim, output_dim=output_dim,
              hidden_layers=hidden_layers, activation="Tanh", key=key)

    y = mlp(x)
    y = jax.block_until_ready(y)

    y_ref = mlp.reference(x)
    assert y.shape == (batch, output_dim)
    assert jnp.allclose(y, y_ref, atol=1e-5, rtol=1e-5), "mismatch vs reference"

    print("KERNEL_OK")
</pallas_src>

<mosaic_0001>
module attributes {stable_mosaic.version = 11 : i64} {
  func.func @_mlp_fused_kernel(%arg0: i32, %arg1: memref<16x4xf32, #tpu.memory_space<vmem>>, %arg2: memref<4x128xf32, #tpu.memory_space<vmem>>, %arg3: memref<1x128xf32, #tpu.memory_space<vmem>>, %arg4: memref<128x128xf32, #tpu.memory_space<vmem>>, %arg5: memref<1x128xf32, #tpu.memory_space<vmem>>, %arg6: memref<128x128xf32, #tpu.memory_space<vmem>>, %arg7: memref<1x128xf32, #tpu.memory_space<vmem>>, %arg8: memref<16x128xf32, #tpu.memory_space<vmem>>) attributes {dimension_semantics = [#tpu.dimension_semantics<parallel>], iteration_bounds = array<i64: 1>, scalar_prefetch = 0 : i64, scratch_operands = 0 : i64, tpu.core_type = #tpu.core_type<tc>, window_params = [{transform_indices = @transform_0, window_bounds = array<i64: 16, 4>}, {pipeline_mode = #tpu.pipeline_mode<synchronous>, transform_indices = @transform_1, window_bounds = array<i64: 4, 128>}, {pipeline_mode = #tpu.pipeline_mode<synchronous>, transform_indices = @transform_2, window_bounds = array<i64: 1, 128>}, {pipeline_mode = #tpu.pipeline_mode<synchronous>, transform_indices = @transform_3, window_bounds = array<i64: 128, 128>}, {pipeline_mode = #tpu.pipeline_mode<synchronous>, transform_indices = @transform_4, window_bounds = array<i64: 1, 128>}, {pipeline_mode = #tpu.pipeline_mode<synchronous>, transform_indices = @transform_5, window_bounds = array<i64: 128, 128>}, {pipeline_mode = #tpu.pipeline_mode<synchronous>, transform_indices = @transform_6, window_bounds = array<i64: 1, 128>}, {transform_indices = @transform_7, window_bounds = array<i64: 16, 128>}]} {
    %c0 = arith.constant 0 : index
    %c0_0 = arith.constant 0 : index
    %0 = vector.load %arg1[%c0, %c0_0] : memref<16x4xf32, #tpu.memory_space<vmem>>, vector<16x4xf32>
    %c0_1 = arith.constant 0 : index
    %c0_2 = arith.constant 0 : index
    %1 = vector.load %arg2[%c0_1, %c0_2] : memref<4x128xf32, #tpu.memory_space<vmem>>, vector<4x128xf32>
    %c0_3 = arith.constant 0 : index
    %c0_4 = arith.constant 0 : index
    %2 = vector.load %arg3[%c0_3, %c0_4] : memref<1x128xf32, #tpu.memory_space<vmem>>, vector<1x128xf32>
    %cst = arith.constant dense<0.000000e+00> : vector<16x128xf32>
    %3 = tpu.matmul %0, %1, %cst {dimension_numbers = #tpu.dot_dimension_numbers<[1], [0], [0], [1], [0, 0, 1, 1], [], []>} : vector<16x4xf32>, vector<4x128xf32>, vector<16x128xf32> -> vector<16x128xf32>
    %4 = vector.broadcast %2 : vector<1x128xf32> to vector<16x128xf32>
    %5 = arith.addf %3, %4 : vector<16x128xf32>
    %6 = math.tanh %5 : vector<16x128xf32>
    %c0_5 = arith.constant 0 : index
    %c0_6 = arith.constant 0 : index
    %7 = vector.load %arg4[%c0_5, %c0_6] : memref<128x128xf32, #tpu.memory_space<vmem>>, vector<128x128xf32>
    %c0_7 = arith.constant 0 : index
    %c0_8 = arith.constant 0 : index
    %8 = vector.load %arg5[%c0_7, %c0_8] : memref<1x128xf32, #tpu.memory_space<vmem>>, vector<1x128xf32>
    %cst_9 = arith.constant dense<0.000000e+00> : vector<16x128xf32>
    %9 = tpu.matmul %6, %7, %cst_9 {dimension_numbers = #tpu.dot_dimension_numbers<[1], [0], [0], [1], [0, 0, 1, 1], [], []>} : vector<16x128xf32>, vector<128x128xf32>, vector<16x128xf32> -> vector<16x128xf32>
    %10 = vector.broadcast %8 : vector<1x128xf32> to vector<16x128xf32>
    %11 = arith.addf %9, %10 : vector<16x128xf32>
    %12 = math.tanh %11 : vector<16x128xf32>
    %c0_10 = arith.constant 0 : index
    %c0_11 = arith.constant 0 : index
    %13 = vector.load %arg6[%c0_10, %c0_11] : memref<128x128xf32, #tpu.memory_space<vmem>>, vector<128x128xf32>
    %c0_12 = arith.constant 0 : index
    %c0_13 = arith.constant 0 : index
    %14 = vector.load %arg7[%c0_12, %c0_13] : memref<1x128xf32, #tpu.memory_space<vmem>>, vector<1x128xf32>
    %cst_14 = arith.constant dense<0.000000e+00> : vector<16x128xf32>
    %15 = tpu.matmul %12, %13, %cst_14 {dimension_numbers = #tpu.dot_dimension_numbers<[1], [0], [0], [1], [0, 0, 1, 1], [], []>} : vector<16x128xf32>, vector<128x128xf32>, vector<16x128xf32> -> vector<16x128xf32>
    %16 = vector.broadcast %14 : vector<1x128xf32> to vector<16x128xf32>
    %17 = arith.addf %15, %16 : vector<16x128xf32>
    %c0_15 = arith.constant 0 : index
    %c0_16 = arith.constant 0 : index
    %18 = vector.load %arg8[%c0_15, %c0_16] : memref<16x128xf32, #tpu.memory_space<vmem>>, vector<16x128xf32>
    tpu.vector_store %arg8[%c0_15, %c0_16], %17 {strides = array<i32>} : memref<16x128xf32, #tpu.memory_space<vmem>>, vector<16x128xf32>,
    return
  }
  func.func @transform_0(%arg0: i32) -> (i32, i32) {
    %c0_i32 = arith.constant 0 : i32
    %c0_i32_0 = arith.constant 0 : i32
    return %arg0, %c0_i32 : i32, i32
  }
  func.func @transform_1(%arg0: i32) -> (i32, i32) {
    %c0_i32 = arith.constant 0 : i32
    %c0_i32_0 = arith.constant 0 : i32
    %c0_i32_1 = arith.constant 0 : i32
    return %c0_i32, %c0_i32_0 : i32, i32
  }
  func.func @transform_2(%arg0: i32) -> (i32, i32) {
    %c0_i32 = arith.constant 0 : i32
    %c0_i32_0 = arith.constant 0 : i32
    %c0_i32_1 = arith.constant 0 : i32
    return %c0_i32, %c0_i32_0 : i32, i32
  }
  func.func @transform_3(%arg0: i32) -> (i32, i32) {
    %c0_i32 = arith.constant 0 : i32
    %c0_i32_0 = arith.constant 0 : i32
    %c0_i32_1 = arith.constant 0 : i32
    return %c0_i32, %c0_i32_0 : i32, i32
  }
  func.func @transform_4(%arg0: i32) -> (i32, i32) {
    %c0_i32 = arith.constant 0 : i32
    %c0_i32_0 = arith.constant 0 : i32
    %c0_i32_1 = arith.constant 0 : i32
    return %c0_i32, %c0_i32_0 : i32, i32
  }
  func.func @transform_5(%arg0: i32) -> (i32, i32) {
    %c0_i32 = arith.constant 0 : i32
    %c0_i32_0 = arith.constant 0 : i32
    %c0_i32_1 = arith.constant 0 : i32
    return %c0_i32, %c0_i32_0 : i32, i32
  }
  func.func @transform_6(%arg0: i32) -> (i32, i32) {
    %c0_i32 = arith.constant 0 : i32
    %c0_i32_0 = arith.constant 0 : i32
    %c0_i32_1 = arith.constant 0 : i32
    return %c0_i32, %c0_i32_0 : i32, i32
  }
  func.func @transform_7(%arg0: i32) -> (i32, i32) {
    %c0_i32 = arith.constant 0 : i32
    %c0_i32_0 = arith.constant 0 : i32
    return %arg0, %c0_i32 : i32, i32
  }
}

module attributes {stable_mosaic.version = 11 : i64} {
  func.func @_mlp_fused_kernel(%arg0: i32, %arg1: memref<16x4xf32, #tpu.memory_space<vmem>>, %arg2: memref<4x128xf32, #tpu.memory_space<vmem>>, %arg3: memref<1x128xf32, #tpu.memory_space<vmem>>, %arg4: memref<128x128xf32, #tpu.memory_space<vmem>>, %arg5: memref<1x128xf32, #tpu.memory_space<vmem>>, %arg6: memref<128x128xf32, #tpu.memory_space<vmem>>, %arg7: memref<1x128xf32, #tpu.memory_space<vmem>>, %arg8: memref<16x128xf32, #tpu.memory_space<vmem>>) attributes {dimension_semantics = [#tpu.dimension_semantics<parallel>], iteration_bounds = array<i64: 1>, scalar_prefetch = 0 : i64, scratch_operands = 0 : i64, tpu.core_type = #tpu.core_type<tc>, window_params = [{transform_indices = @transform_0, window_bounds = array<i64: 16, 4>}, {pipeline_mode = #tpu.pipeline_mode<synchronous>, transform_indices = @transform_1, window_bounds = array<i64: 4, 128>}, {pipeline_mode = #tpu.pipeline_mode<synchronous>, transform_indices = @transform_2, window_bounds = array<i64: 1, 128>}, {pipeline_mode = #tpu.pipeline_mode<synchronous>, transform_indices = @transform_3, window_bounds = array<i64: 128, 128>}, {pipeline_mode = #tpu.pipeline_mode<synchronous>, transform_indices = @transform_4, window_bounds = array<i64: 1, 128>}, {pipeline_mode = #tpu.pipeline_mode<synchronous>, transform_indices = @transform_5, window_bounds = array<i64: 128, 128>}, {pipeline_mode = #tpu.pipeline_mode<synchronous>, transform_indices = @transform_6, window_bounds = array<i64: 1, 128>}, {transform_indices = @transform_7, window_bounds = array<i64: 16, 128>}]} {
    %c0 = arith.constant 0 : index
    %c0_0 = arith.constant 0 : index
    %0 = vector.load %arg1[%c0, %c0_0] : memref<16x4xf32, #tpu.memory_space<vmem>>, vector<16x4xf32>
    %c0_1 = arith.constant 0 : index
    %c0_2 = arith.constant 0 : index
    %1 = vector.load %arg2[%c0_1, %c0_2] : memref<4x128xf32, #tpu.memory_space<vmem>>, vector<4x128xf32>
    %c0_3 = arith.constant 0 : index
    %c0_4 = arith.constant 0 : index
    %2 = vector.load %arg3[%c0_3, %c0_4] : memref<1x128xf32, #tpu.memory_space<vmem>>, vector<1x128xf32>
    %cst = arith.constant dense<0.000000e+00> : vector<16x128xf32>
    %3 = tpu.matmul %0, %1, %cst {dimension_numbers = #tpu.dot_dimension_numbers<[1], [0], [0], [1], [0, 0, 1, 1], [], []>} : vector<16x4xf32>, vector<4x128xf32>, vector<16x128xf32> -> vector<16x128xf32>
    %4 = vector.broadcast %2 : vector<1x128xf32> to vector<16x128xf32>
    %5 = arith.addf %3, %4 : vector<16x128xf32>
    %6 = math.tanh %5 : vector<16x128xf32>
    %c0_5 = arith.constant 0 : index
    %c0_6 = arith.constant 0 : index
    %7 = vector.load %arg4[%c0_5, %c0_6] : memref<128x128xf32, #tpu.memory_space<vmem>>, vector<128x128xf32>
    %c0_7 = arith.constant 0 : index
    %c0_8 = arith.constant 0 : index
    %8 = vector.load %arg5[%c0_7, %c0_8] : memref<1x128xf32, #tpu.memory_space<vmem>>, vector<1x128xf32>
    %cst_9 = arith.constant dense<0.000000e+00> : vector<16x128xf32>
    %9 = tpu.matmul %6, %7, %cst_9 {dimension_numbers = #tpu.dot_dimension_numbers<[1], [0], [0], [1], [0, 0, 1, 1], [], []>} : vector<16x128xf32>, vector<128x128xf32>, vector<16x128xf32> -> vector<16x128xf32>
    %10 = vector.broadcast %8 : vector<1x128xf32> to vector<16x128xf32>
    %11 = arith.addf %9, %10 : vector<16x128xf32>
    %12 = math.tanh %11 : vector<16x128xf32>
    %c0_10 = arith.constant 0 : index
    %c0_11 = arith.constant 0 : index
    %13 = vector.load %arg6[%c0_10, %c0_11] : memref<128x128xf32, #tpu.memory_space<vmem>>, vector<128x128xf32>
    %c0_12 = arith.constant 0 : index
    %c0_13 = arith.constant 0 : index
    %14 = vector.load %arg7[%c0_12, %c0_13] : memref<1x128xf32, #tpu.memory_space<vmem>>, vector<1x128xf32>
    %cst_14 = arith.constant dense<0.000000e+00> : vector<16x128xf32>
    %15 = tpu.matmul %12, %13, %cst_14 {dimension_numbers = #tpu.dot_dimension_numbers<[1], [0], [0], [1], [0, 0, 1, 1], [], []>} : vector<16x128xf32>, vector<128x128xf32>, vector<16x128xf32> -> vector<16x128xf32>
    %16 = vector.broadcast %14 : vector<1x128xf32> to vector<16x128xf32>
    %17 = arith.addf %15, %16 : vector<16x128xf32>
    %c0_15 = arith.constant 0 : index
    %c0_16 = arith.constant 0 : index
    %18 = vector.load %arg8[%c0_15, %c0_16] : memref<16x128xf32, #tpu.memory_space<vmem>>, vector<16x128xf32>
    tpu.vector_store %arg8[%c0_15, %c0_16], %17 {strides = array<i32>} : memref<16x128xf32, #tpu.memory_space<vmem>>, vector<16x128xf32>,
    return
  }
  func.func @transform_0(%arg0: i32) -> (i32, i32) {
    %c0_i32 = arith.constant 0 : i32
    %c0_i32_0 = arith.constant 0 : i32
    return %arg0, %c0_i32 : i32, i32
  }
  func.func @transform_1(%arg0: i32) -> (i32, i32) {
    %c0_i32 = arith.constant 0 : i32
    %c0_i32_0 = arith.constant 0 : i32
    %c0_i32_1 = arith.constant 0 : i32
    return %c0_i32, %c0_i32_0 : i32, i32
  }
  func.func @transform_2(%arg0: i32) -> (i32, i32) {
    %c0_i32 = arith.constant 0 : i32
    %c0_i32_0 = arith.constant 0 : i32
    %c0_i32_1 = arith.constant 0 : i32
    return %c0_i32, %c0_i32_0 : i32, i32
  }
  func.func @transform_3(%arg0: i32) -> (i32, i32) {
    %c0_i32 = arith.constant 0 : i32
    %c0_i32_0 = arith.constant 0 : i32
    %c0_i32_1 = arith.constant 0 : i32
    return %c0_i32, %c0_i32_0 : i32, i32
  }
  func.func @transform_4(%arg0: i32) -> (i32, i32) {
    %c0_i32 = arith.constant 0 : i32
    %c0_i32_0 = arith.constant 0 : i32
    %c0_i32_1 = arith.constant 0 : i32
    return %c0_i32, %c0_i32_0 : i32, i32
  }
  func.func @transform_5(%arg0: i32) -> (i32, i32) {
    %c0_i32 = arith.constant 0 : i32
    %c0_i32_0 = arith.constant 0 : i32
    %c0_i32_1 = arith.constant 0 : i32
    return %c0_i32, %c0_i32_0 : i32, i32
  }
  func.func @transform_6(%arg0: i32) -> (i32, i32) {
    %c0_i32 = arith.constant 0 : i32
    %c0_i32_0 = arith.constant 0 : i32
    %c0_i32_1 = arith.constant 0 : i32
    return %c0_i32, %c0_i32_0 : i32, i32
  }
  func.func @transform_7(%arg0: i32) -> (i32, i32) {
    %c0_i32 = arith.constant 0 : i32
    %c0_i32_0 = arith.constant 0 : i32
    return %arg0, %c0_i32 : i32, i32
  }
}

</mosaic_0001>

<bundles_post_ra>
// kernel: tpu_custom_call.1
= control target key start
LH: loop header
LB: loop body
LE: loop exit
PB: predicated region body
PF: predicated region fallthrough
CT: control target
= control target key end

     0   :  { %12 = vsyncpa [#allocation3], 0  ;;  %s424_s0 = inlined_call_operand.vmem [shape: f32[16,4], index: 0, kind: input, shape index: {}]   ;;  %s425_s1 = inlined_call_operand.vmem [shape: f32[4,128], index: 1, kind: input, shape index: {}]   ;;  %s426_s2 = inlined_call_operand.vmem [shape: f32[1,128], index: 2, kind: input, shape index: {}]   ;;  %s427_s3 = inlined_call_operand.hbm [shape: f32[128,128], index: 3, kind: input, shape index: {}]   ;;  %s428_s4 = inlined_call_operand.vmem [shape: f32[1,128], index: 4, kind: input, shape index: {}]   ;;  %s429_s5 = inlined_call_operand.hbm [shape: f32[128,128], index: 5, kind: input, shape index: {}]   ;;  %s430_s6 = inlined_call_operand.vmem [shape: f32[1,128], index: 6, kind: input, shape index: {}]   ;;  %s431_s7 = inlined_call_operand.hbm [shape: f32[16,128], index: 7, kind: output, shape index: {}]  }
   0x1   :  { %13 = vsyncpa [#allocation6], 0 }
   0x2   :  { %14 = vsyncpa [#allocation4], 0  ;;  %s25_s26 = sshll.u32 %s427_s3, 4  ;;  %s341_s27 = smov [#allocation2]   ;;  %s26_s26 = int_to_ptr.hbm [resolvable:$true] %s25_s26 }
   0x3   :  { %s27_s28 = sshll.u32 %s341_s27, 4  ;;  %s40_s8 = sshll.u32 %s429_s5, 4  ;;  %s28_s28 = int_to_ptr.vmem [resolvable:$true] %s27_s28  ;;  %s41_s8 = int_to_ptr.hbm [resolvable:$true] %s40_s8 }
   0x4   :  { %s342_s9 = smov 128   ;;  %s343_s10 = smov 8  }
   0x5   :  { %33 = dma.hbm_to_vmem [thread:$0]  %s26_s26, 2048, %s28_s28, [#allocation3], %s342_s9, %s342_s9, %s343_s10  }
   0x6   :  { %s344_s11 = smov [#allocation5]  }
   0x7   :  { %s42_s12 = sshll.u32 %s344_s11, 4  ;;  %s43_s12 = int_to_ptr.vmem [resolvable:$true] %s42_s12 }
   0x8   :  { %48 = dma.hbm_to_vmem [thread:$0]  %s41_s8, 2048, %s43_s12, [#allocation6], %s342_s9, %s342_s9, %s343_s10  }
   0x9   :  { %335 = dma.done.wait [#allocation3], 2048  }
   0xa   :  { %336 = vsyncadd [#allocation3], 4294965248 }
   0xb   :  { %337 = dma.done.wait [#allocation6], 2048  }
   0xc   :  { %338 = vsyncadd [#allocation6], 4294965248  ;;  %vm73_vm0 = vcmask 1043456   ;;  %vm66_vm1 = vcmask 31744   ;;  %v61_v0 = vld [vmem:[%s425_s1] sm:$0xf] }
   0xd   :  { %v59_v1 = vld [vmem:[%s424_s0] sm:$0xff]  ;;  %212 = vmatpush.msk.msra.mxu0 %vm73_vm0, %v61_v0  ;;  %v117_v2 = vld [vmem:[#allocation2 + $0x78] sm:$0xff]  ;;  %v116_v3 = vld [vmem:[#allocation2 + $0x70] sm:$0xff]  ;;  %s345_s20 = smov [#allocation7]   ;;  %s198_s23 = sshll.u32 %s431_s7, 4  ;;  %s199_s23 = int_to_ptr.hbm [resolvable:$true] %s198_s23 }
   0xe   :  { %213 = vmatmul.msk.f32.vlgmr.msra.gmra.mxu0 %vm66_vm1, %v59_v1  ;;  %122 = vmatpush.msra.mxu1 %v117_v2  ;;  %v115_v4 = vld [vmem:[#allocation2 + $0x68] sm:$0xff]  ;;  %v114_v5 = vld [vmem:[#allocation2 + $0x60] sm:$0xff]  ;;  %v113_v7 = vld [vmem:[#allocation2 + $0x58] sm:$0xff]  ;;  %s196_s21 = sshll.u32 %s345_s20, 4  ;;  %s197_s21 = int_to_ptr.vmem [resolvable:$true] %s196_s21 }
   0xf   :  { %215 = vmatpush.msra.mxu3 %v117_v2  ;;  %v60_v6 = vld [vmem:[%s424_s0 + $0x8] sm:$0xff]  ;;  %v112_v8 = vld [vmem:[#allocation2 + $0x50] sm:$0xff]  ;;  %v110_v10 = vld [vmem:[#allocation2 + $0x40] sm:$0xff] }
  0x10   :  { %123 = vmatpush.msra.mxu1 %v116_v3  ;;  %v111_v9 = vld [vmem:[#allocation2 + $0x48] sm:$0xff]  ;;  %v109_v11 = vld [vmem:[#allocation2 + $0x38] sm:$0xff]  ;;  %v108_v12 = vld [vmem:[#allocation2 + $0x30] sm:$0xff] }
  0x11   :  { %216 = vmatpush.msra.mxu3 %v116_v3  ;;  %v107_v13 = vld [vmem:[#allocation2 + $0x28] sm:$0xff]  ;;  %v106_v14 = vld [vmem:[#allocation2 + $0x20] sm:$0xff]  ;;  %v105_v15 = vld [vmem:[#allocation2 + $0x18] sm:$0xff] }
  0x12   :  { %124 = vmatpush.msra.mxu1 %v115_v4  ;;  %v104_v16 = vld [vmem:[#allocation2 + $0x10] sm:$0xff]  ;;  %v103_v17 = vld [vmem:[#allocation2 + $0x8] sm:$0xff]  ;;  %v102_v18 = vld [vmem:[#allocation2] sm:$0xff] }
  0x13   :  { %217 = vmatpush.msra.mxu3 %v115_v4  ;;  %v162_v19 = vld [vmem:[#allocation5 + $0x78] sm:$0xff]  ;;  %v161_v20 = vld [vmem:[#allocation5 + $0x70] sm:$0xff]  ;;  %v160_v21 = vld [vmem:[#allocation5 + $0x68] sm:$0xff] }
  0x14   :  { %125 = vmatpush.msra.mxu1 %v114_v5  ;;  %167 = vmatpush.msrb.mxu0 %v162_v19  ;;  %v159_v22 = vld [vmem:[#allocation5 + $0x60] sm:$0xff]  ;;  %v158_v23 = vld [vmem:[#allocation5 + $0x58] sm:$0xff]  ;;  %v157_v24 = vld [vmem:[#allocation5 + $0x50] sm:$0xff] }
  0x15   :  { %218 = vmatpush.msra.mxu3 %v114_v5  ;;  %231 = vmatpush.msra.mxu2 %v162_v19  ;;  %v156_v25 = vld [vmem:[#allocation5 + $0x48] sm:$0xff]  ;;  %v252_v26 = vld [vmem:[%s426_s2] ss:$0 sm:$0xff]  ;;  %v154_v29 = vld [vmem:[#allocation5 + $0x38] sm:$0xff] }
  0x16   :  { %214 = vmatmul.msk.f32.gmra.mxu0 %vm66_vm1, %v60_v6  ;;  %126 = vmatpush.msra.mxu1 %v113_v7  ;;  %v155_v27 = vld [vmem:[#allocation5 + $0x40] sm:$0xff]  ;;  %v153_v31 = vld [vmem:[#allocation5 + $0x30] sm:$0xff]  ;;  %v152_v32 = vld [vmem:[#allocation5 + $0x28] sm:$0xff] }
  0x17   :  { %219 = vmatpush.msra.mxu3 %v113_v7  ;;  %168 = vmatpush.msrb.mxu0 %v161_v20  ;;  %v151_v37 = vld [vmem:[#allocation5 + $0x20] sm:$0xff]  ;;  %v150_v38 = vld [vmem:[#allocation5 + $0x18] sm:$0xff]  ;;  %v149_v39 = vld [vmem:[#allocation5 + $0x10] sm:$0xff] }
  0x18   :  { %127 = vmatpush.msra.mxu1 %v112_v8  ;;  %232 = vmatpush.msra.mxu2 %v161_v20  ;;  %v148_v40 = vld [vmem:[#allocation5 + $0x8] sm:$0xff]  ;;  %v147_v41 = vld [vmem:[#allocation5] sm:$0xff] }
  0x19   :  { %220 = vmatpush.msra.mxu3 %v112_v8  ;;  %169 = vmatpush.msrb.mxu0 %v160_v21  ;;  %v253_v42 = vld [vmem:[%s428_s4] ss:$0 sm:$0xff] }
  0x1a   :  { %128 = vmatpush.msra.mxu1 %v111_v9  ;;  %233 = vmatpush.msra.mxu2 %v160_v21  ;;  %v254_v49 = vld [vmem:[%s430_s6] ss:$0 sm:$0xff] }
  0x1b   :  { %221 = vmatpush.msra.mxu3 %v111_v9  ;;  %170 = vmatpush.msrb.mxu0 %v159_v22 }
  0x1c   :  { %129 = vmatpush.msra.mxu1 %v110_v10  ;;  %234 = vmatpush.msra.mxu2 %v159_v22 }
  0x1d   :  { %222 = vmatpush.msra.mxu3 %v110_v10  ;;  %171 = vmatpush.msrb.mxu0 %v158_v23 }
  0x1e   :  { %130 = vmatpush.msra.mxu1 %v109_v11  ;;  %235 = vmatpush.msra.mxu2 %v158_v23 }
  0x1f   :  { %223 = vmatpush.msra.mxu3 %v109_v11  ;;  %172 = vmatpush.msrb.mxu0 %v157_v24 }
  0x20   :  { %131 = vmatpush.msra.mxu1 %v108_v12  ;;  %236 = vmatpush.msra.mxu2 %v157_v24 }
  0x21   :  { %224 = vmatpush.msra.mxu3 %v108_v12  ;;  %173 = vmatpush.msrb.mxu0 %v156_v25 }
  0x22   :  { %132 = vmatpush.msra.mxu1 %v107_v13  ;;  %237 = vmatpush.msra.mxu2 %v156_v25 }
  0x23   :  { %225 = vmatpush.msra.mxu3 %v107_v13  ;;  %174 = vmatpush.msrb.mxu0 %v155_v27 }
  0x24   :  { %133 = vmatpush.msra.mxu1 %v106_v14  ;;  %238 = vmatpush.msra.mxu2 %v155_v27 }
  0x25   :  { %226 = vmatpush.msra.mxu3 %v106_v14  ;;  %175 = vmatpush.msrb.mxu0 %v154_v29 }
  0x26   :  { %134 = vmatpush.msra.mxu1 %v105_v15  ;;  %239 = vmatpush.msra.mxu2 %v154_v29 }
  0x27   :  { %227 = vmatpush.msra.mxu3 %v105_v15  ;;  %176 = vmatpush.msrb.mxu0 %v153_v31 }
  0x28   :  { %135 = vmatpush.msra.mxu1 %v104_v16  ;;  %240 = vmatpush.msra.mxu2 %v153_v31 }
  0x29   :  { %228 = vmatpush.msra.mxu3 %v104_v16  ;;  %177 = vmatpush.msrb.mxu0 %v152_v32 }
  0x2a   :  { %136 = vmatpush.msra.mxu1 %v103_v17  ;;  %241 = vmatpush.msra.mxu2 %v152_v32 }
  0x2b   :  { %229 = vmatpush.msra.mxu3 %v103_v17  ;;  %178 = vmatpush.msrb.mxu0 %v151_v37 }
  0x2c   :  { %137 = vmatpush.msra.mxu1 %v102_v18  ;;  %242 = vmatpush.msra.mxu2 %v151_v37 }
  0x2d   :  { %230 = vmatpush.msra.mxu3 %v102_v18  ;;  %179 = vmatpush.msrb.mxu0 %v150_v38 }
  0x2e   :  { %243 = vmatpush.msra.mxu2 %v150_v38 }
  0x2f   :  { %180 = vmatpush.msrb.mxu0 %v149_v39 }
  0x30   :  { %244 = vmatpush.msra.mxu2 %v149_v39 }
  0x31   :  { %181 = vmatpush.msrb.mxu0 %v148_v40 }
  0x32   :  { %245 = vmatpush.msra.mxu2 %v148_v40 }
  0x33   :  { %182 = vmatpush.msrb.mxu0 %v147_v41 }
  0x34   :  { %246 = vmatpush.msra.mxu2 %v147_v41 }
  0x8b   :  { %v94_v28 = vpop.f32.mrf.mxu0 }
  0x8c   :  { %v95_v30 = vadd.f32 %v252_v26, %v94_v28 }
  0x8e   :  { %255 = vtanh.f32 %v95_v30 }
  0x93   :  { %v97_v33 = vpop.f32.mrf.mxu0 }
  0x94   :  { %v256_v34 = vpop.eup %255  ;;  %v98_v35 = vadd.f32 %v252_v26, %v97_v33 }
  0x95   :  { %138 = vmatmul.f32.vlgmr.msra.gmra.mxu1 %v256_v34 }
  0x96   :  { %257 = vtanh.f32 %v98_v35 }
  0x9c   :  { %v258_v36 = vpop.eup %257 }
  0x9d   :  { %141 = vmatmul.f32.vlgmr.msra.gmra.mxu3 %v258_v36 }
 0x112   :  { %v139_v43 = vpop.f32.mrf.mxu1 }
 0x113   :  { %v140_v44 = vadd.f32 %v253_v42, %v139_v43 }
 0x115   :  { %259 = vtanh.f32 %v140_v44 }
 0x11b   :  { %v260_v45 = vpop.eup %259 }
 0x11c   :  { %183 = vmatmul.f32.vlgmr.msrb.gmra.mxu0 %v260_v45 }
 0x120   :  { %v142_v46 = vpop.f32.mrf.mxu3 }
 0x121   :  { %v143_v47 = vadd.f32 %v253_v42, %v142_v46 }
 0x123   :  { %261 = vtanh.f32 %v143_v47 }
 0x129   :  { %v262_v48 = vpop.eup %261 }
 0x12a   :  { %186 = vmatmul.f32.vlgmr.msra.gmra.mxu2 %v262_v48 }
 0x199   :  { %v184_v50 = vpop.f32.mrf.mxu0 }
 0x19a   :  { %v185_v51 = vadd.f32 %v254_v49, %v184_v50 }
 0x19c   :  { %190 = vst [vmem:[#allocation7] sm:$0xff] %v185_v51 }
 0x1ad   :  { %v187_v52 = vpop.f32.mrf.mxu2 }
 0x1ae   :  { %v188_v53 = vadd.f32 %v254_v49, %v187_v52 }
 0x1b0   :  { %191 = vst [vmem:[#allocation7 + $0x8] sm:$0xff] %v188_v53 }
 0x1b1   :  { %204 = dma.vmem_to_hbm [thread:$0]  %s197_s21, 256, %s199_s23, [#allocation4], %s342_s9, %s342_s9, %s343_s10  }
 0x1b2   :  { %339 = dma.done.wait [#allocation4], 256  }
 0x1b3   :  { %340 = vsyncadd [#allocation4], 4294967040 }
 0x1b4   :  { %209 = vsyncpa [#allocation3], 1 }
 0x1b5   :  { %210 = vsyncpa [#allocation6], 1 }
 0x1b6   :  { %211 = vsyncpa [#allocation4], 1 }

// kernel: tpu_custom_call.1
= control target key start
LH: loop header
LB: loop body
LE: loop exit
PB: predicated region body
PF: predicated region fallthrough
CT: control target
= control target key end

     0   :  { %12 = vsyncpa [#allocation3], 0  ;;  %s424_s0 = inlined_call_operand.vmem [shape: f32[16,4], index: 0, kind: input, shape index: {}]   ;;  %s425_s1 = inlined_call_operand.vmem [shape: f32[4,128], index: 1, kind: input, shape index: {}]   ;;  %s426_s2 = inlined_call_operand.vmem [shape: f32[1,128], index: 2, kind: input, shape index: {}]   ;;  %s427_s3 = inlined_call_operand.hbm [shape: f32[128,128], index: 3, kind: input, shape index: {}]   ;;  %s428_s4 = inlined_call_operand.vmem [shape: f32[1,128], index: 4, kind: input, shape index: {}]   ;;  %s429_s5 = inlined_call_operand.hbm [shape: f32[128,128], index: 5, kind: input, shape index: {}]   ;;  %s430_s6 = inlined_call_operand.vmem [shape: f32[1,128], index: 6, kind: input, shape index: {}]   ;;  %s431_s7 = inlined_call_operand.hbm [shape: f32[16,128], index: 7, kind: output, shape index: {}]  }
   0x1   :  { %13 = vsyncpa [#allocation6], 0 }
   0x2   :  { %14 = vsyncpa [#allocation4], 0  ;;  %s25_s26 = sshll.u32 %s427_s3, 4  ;;  %s341_s27 = smov [#allocation2]   ;;  %s26_s26 = int_to_ptr.hbm [resolvable:$true] %s25_s26 }
   0x3   :  { %s27_s28 = sshll.u32 %s341_s27, 4  ;;  %s40_s8 = sshll.u32 %s429_s5, 4  ;;  %s28_s28 = int_to_ptr.vmem [resolvable:$true] %s27_s28  ;;  %s41_s8 = int_to_ptr.hbm [resolvable:$true] %s40_s8 }
   0x4   :  { %s342_s9 = smov 128   ;;  %s343_s10 = smov 8  }
   0x5   :  { %33 = dma.hbm_to_vmem [thread:$0]  %s26_s26, 2048, %s28_s28, [#allocation3], %s342_s9, %s342_s9, %s343_s10  }
   0x6   :  { %s344_s11 = smov [#allocation5]  }
   0x7   :  { %s42_s12 = sshll.u32 %s344_s11, 4  ;;  %s43_s12 = int_to_ptr.vmem [resolvable:$true] %s42_s12 }
   0x8   :  { %48 = dma.hbm_to_vmem [thread:$0]  %s41_s8, 2048, %s43_s12, [#allocation6], %s342_s9, %s342_s9, %s343_s10  }
   0x9   :  { %335 = dma.done.wait [#allocation3], 2048  }
   0xa   :  { %336 = vsyncadd [#allocation3], 4294965248 }
   0xb   :  { %337 = dma.done.wait [#allocation6], 2048  }
   0xc   :  { %338 = vsyncadd [#allocation6], 4294965248  ;;  %vm73_vm0 = vcmask 1043456   ;;  %vm66_vm1 = vcmask 31744   ;;  %v61_v0 = vld [vmem:[%s425_s1] sm:$0xf] }
   0xd   :  { %v59_v1 = vld [vmem:[%s424_s0] sm:$0xff]  ;;  %212 = vmatpush.msk.msra.mxu0 %vm73_vm0, %v61_v0  ;;  %v117_v2 = vld [vmem:[#allocation2 + $0x78] sm:$0xff]  ;;  %v116_v3 = vld [vmem:[#allocation2 + $0x70] sm:$0xff]  ;;  %s345_s20 = smov [#allocation7]   ;;  %s198_s23 = sshll.u32 %s431_s7, 4  ;;  %s199_s23 = int_to_ptr.hbm [resolvable:$true] %s198_s23 }
   0xe   :  { %213 = vmatmul.msk.f32.vlgmr.msra.gmra.mxu0 %vm66_vm1, %v59_v1  ;;  %122 = vmatpush.msra.mxu1 %v117_v2  ;;  %v115_v4 = vld [vmem:[#allocation2 + $0x68] sm:$0xff]  ;;  %v114_v5 = vld [vmem:[#allocation2 + $0x60] sm:$0xff]  ;;  %v113_v7 = vld [vmem:[#allocation2 + $0x58] sm:$0xff]  ;;  %s196_s21 = sshll.u32 %s345_s20, 4  ;;  %s197_s21 = int_to_ptr.vmem [resolvable:$true] %s196_s21 }
   0xf   :  { %215 = vmatpush.msra.mxu3 %v117_v2  ;;  %v60_v6 = vld [vmem:[%s424_s0 + $0x8] sm:$0xff]  ;;  %v112_v8 = vld [vmem:[#allocation2 + $0x50] sm:$0xff]  ;;  %v110_v10 = vld [vmem:[#allocation2 + $0x40] sm:$0xff] }
  0x10   :  { %123 = vmatpush.msra.mxu1 %v116_v3  ;;  %v111_v9 = vld [vmem:[#allocation2 + $0x48] sm:$0xff]  ;;  %v109_v11 = vld [vmem:[#allocation2 + $0x38] sm:$0xff]  ;;  %v108_v12 = vld [vmem:[#allocation2 + $0x30] sm:$0xff] }
  0x11   :  { %216 = vmatpush.msra.mxu3 %v116_v3  ;;  %v107_v13 = vld [vmem:[#allocation2 + $0x28] sm:$0xff]  ;;  %v106_v14 = vld [vmem:[#allocation2 + $0x20] sm:$0xff]  ;;  %v105_v15 = vld [vmem:[#allocation2 + $0x18] sm:$0xff] }
  0x12   :  { %124 = vmatpush.msra.mxu1 %v115_v4  ;;  %v104_v16 = vld [vmem:[#allocation2 + $0x10] sm:$0xff]  ;;  %v103_v17 = vld [vmem:[#allocation2 + $0x8] sm:$0xff]  ;;  %v102_v18 = vld [vmem:[#allocation2] sm:$0xff] }
  0x13   :  { %217 = vmatpush.msra.mxu3 %v115_v4  ;;  %v162_v19 = vld [vmem:[#allocation5 + $0x78] sm:$0xff]  ;;  %v161_v20 = vld [vmem:[#allocation5 + $0x70] sm:$0xff]  ;;  %v160_v21 = vld [vmem:[#allocation5 + $0x68] sm:$0xff] }
  0x14   :  { %125 = vmatpush.msra.mxu1 %v114_v5  ;;  %167 = vmatpush.msrb.mxu0 %v162_v19  ;;  %v159_v22 = vld [vmem:[#allocation5 + $0x60] sm:$0xff]  ;;  %v158_v23 = vld [vmem:[#allocation5 + $0x58] sm:$0xff]  ;;  %v157_v24 = vld [vmem:[#allocation5 + $0x50] sm:$0xff] }
  0x15   :  { %218 = vmatpush.msra.mxu3 %v114_v5  ;;  %231 = vmatpush.msra.mxu2 %v162_v19  ;;  %v156_v25 = vld [vmem:[#allocation5 + $0x48] sm:$0xff]  ;;  %v252_v26 = vld [vmem:[%s426_s2] ss:$0 sm:$0xff]  ;;  %v154_v29 = vld [vmem:[#allocation5 + $0x38] sm:$0xff] }
  0x16   :  { %214 = vmatmul.msk.f32.gmra.mxu0 %vm66_vm1, %v60_v6  ;;  %126 = vmatpush.msra.mxu1 %v113_v7  ;;  %v155_v27 = vld [vmem:[#allocation5 + $0x40] sm:$0xff]  ;;  %v153_v31 = vld [vmem:[#allocation5 + $0x30] sm:$0xff]  ;;  %v152_v32 = vld [vmem:[#allocation5 + $0x28] sm:$0xff] }
  0x17   :  { %219 = vmatpush.msra.mxu3 %v113_v7  ;;  %168 = vmatpush.msrb.mxu0 %v161_v20  ;;  %v151_v37 = vld [vmem:[#allocation5 + $0x20] sm:$0xff]  ;;  %v150_v38 = vld [vmem:[#allocation5 + $0x18] sm:$0xff]  ;;  %v149_v39 = vld [vmem:[#allocation5 + $0x10] sm:$0xff] }
  0x18   :  { %127 = vmatpush.msra.mxu1 %v112_v8  ;;  %232 = vmatpush.msra.mxu2 %v161_v20  ;;  %v148_v40 = vld [vmem:[#allocation5 + $0x8] sm:$0xff]  ;;  %v147_v41 = vld [vmem:[#allocation5] sm:$0xff] }
  0x19   :  { %220 = vmatpush.msra.mxu3 %v112_v8  ;;  %169 = vmatpush.msrb.mxu0 %v160_v21  ;;  %v253_v42 = vld [vmem:[%s428_s4] ss:$0 sm:$0xff] }
  0x1a   :  { %128 = vmatpush.msra.mxu1 %v111_v9  ;;  %233 = vmatpush.msra.mxu2 %v160_v21  ;;  %v254_v49 = vld [vmem:[%s430_s6] ss:$0 sm:$0xff] }
  0x1b   :  { %221 = vmatpush.msra.mxu3 %v111_v9  ;;  %170 = vmatpush.msrb.mxu0 %v159_v22 }
  0x1c   :  { %129 = vmatpush.msra.mxu1 %v110_v10  ;;  %234 = vmatpush.msra.mxu2 %v159_v22 }
  0x1d   :  { %222 = vmatpush.msra.mxu3 %v110_v10  ;;  %171 = vmatpush.msrb.mxu0 %v158_v23 }
  0x1e   :  { %130 = vmatpush.msra.mxu1 %v109_v11  ;;  %235 = vmatpush.msra.mxu2 %v158_v23 }
  0x1f   :  { %223 = vmatpush.msra.mxu3 %v109_v11  ;;  %172 = vmatpush.msrb.mxu0 %v157_v24 }
  0x20   :  { %131 = vmatpush.msra.mxu1 %v108_v12  ;;  %236 = vmatpush.msra.mxu2 %v157_v24 }
  0x21   :  { %224 = vmatpush.msra.mxu3 %v108_v12  ;;  %173 = vmatpush.msrb.mxu0 %v156_v25 }
  0x22   :  { %132 = vmatpush.msra.mxu1 %v107_v13  ;;  %237 = vmatpush.msra.mxu2 %v156_v25 }
  0x23   :  { %225 = vmatpush.msra.mxu3 %v107_v13  ;;  %174 = vmatpush.msrb.mxu0 %v155_v27 }
  0x24   :  { %133 = vmatpush.msra.mxu1 %v106_v14  ;;  %238 = vmatpush.msra.mxu2 %v155_v27 }
  0x25   :  { %226 = vmatpush.msra.mxu3 %v106_v14  ;;  %175 = vmatpush.msrb.mxu0 %v154_v29 }
  0x26   :  { %134 = vmatpush.msra.mxu1 %v105_v15  ;;  %239 = vmatpush.msra.mxu2 %v154_v29 }
  0x27   :  { %227 = vmatpush.msra.mxu3 %v105_v15  ;;  %176 = vmatpush.msrb.mxu0 %v153_v31 }
  0x28   :  { %135 = vmatpush.msra.mxu1 %v104_v16  ;;  %240 = vmatpush.msra.mxu2 %v153_v31 }
  0x29   :  { %228 = vmatpush.msra.mxu3 %v104_v16  ;;  %177 = vmatpush.msrb.mxu0 %v152_v32 }
  0x2a   :  { %136 = vmatpush.msra.mxu1 %v103_v17  ;;  %241 = vmatpush.msra.mxu2 %v152_v32 }
  0x2b   :  { %229 = vmatpush.msra.mxu3 %v103_v17  ;;  %178 = vmatpush.msrb.mxu0 %v151_v37 }
  0x2c   :  { %137 = vmatpush.msra.mxu1 %v102_v18  ;;  %242 = vmatpush.msra.mxu2 %v151_v37 }
  0x2d   :  { %230 = vmatpush.msra.mxu3 %v102_v18  ;;  %179 = vmatpush.msrb.mxu0 %v150_v38 }
  0x2e   :  { %243 = vmatpush.msra.mxu2 %v150_v38 }
  0x2f   :  { %180 = vmatpush.msrb.mxu0 %v149_v39 }
  0x30   :  { %244 = vmatpush.msra.mxu2 %v149_v39 }
  0x31   :  { %181 = vmatpush.msrb.mxu0 %v148_v40 }
  0x32   :  { %245 = vmatpush.msra.mxu2 %v148_v40 }
  0x33   :  { %182 = vmatpush.msrb.mxu0 %v147_v41 }
  0x34   :  { %246 = vmatpush.msra.mxu2 %v147_v41 }
  0x8b   :  { %v94_v28 = vpop.f32.mrf.mxu0 }
  0x8c   :  { %v95_v30 = vadd.f32 %v252_v26, %v94_v28 }
  0x8e   :  { %255 = vtanh.f32 %v95_v30 }
  0x93   :  { %v97_v33 = vpop.f32.mrf.mxu0 }
  0x94   :  { %v256_v34 = vpop.eup %255  ;;  %v98_v35 = vadd.f32 %v252_v26, %v97_v33 }
  0x95   :  { %138 = vmatmul.f32.vlgmr.msra.gmra.mxu1 %v256_v34 }
  0x96   :  { %257 = vtanh.f32 %v98_v35 }
  0x9c   :  { %v258_v36 = vpop.eup %257 }
  0x9d   :  { %141 = vmatmul.f32.vlgmr.msra.gmra.mxu3 %v258_v36 }
 0x112   :  { %v139_v43 = vpop.f32.mrf.mxu1 }
 0x113   :  { %v140_v44 = vadd.f32 %v253_v42, %v139_v43 }
 0x115   :  { %259 = vtanh.f32 %v140_v44 }
 0x11b   :  { %v260_v45 = vpop.eup %259 }
 0x11c   :  { %183 = vmatmul.f32.vlgmr.msrb.gmra.mxu0 %v260_v45 }
 0x120   :  { %v142_v46 = vpop.f32.mrf.mxu3 }
 0x121   :  { %v143_v47 = vadd.f32 %v253_v42, %v142_v46 }
 0x123   :  { %261 = vtanh.f32 %v143_v47 }
 0x129   :  { %v262_v48 = vpop.eup %261 }
 0x12a   :  { %186 = vmatmul.f32.vlgmr.msra.gmra.mxu2 %v262_v48 }
 0x199   :  { %v184_v50 = vpop.f32.mrf.mxu0 }
 0x19a   :  { %v185_v51 = vadd.f32 %v254_v49, %v184_v50 }
 0x19c   :  { %190 = vst [vmem:[#allocation7] sm:$0xff] %v185_v51 }
 0x1ad   :  { %v187_v52 = vpop.f32.mrf.mxu2 }
 0x1ae   :  { %v188_v53 = vadd.f32 %v254_v49, %v187_v52 }
 0x1b0   :  { %191 = vst [vmem:[#allocation7 + $0x8] sm:$0xff] %v188_v53 }
 0x1b1   :  { %204 = dma.vmem_to_hbm [thread:$0]  %s197_s21, 256, %s199_s23, [#allocation4], %s342_s9, %s342_s9, %s343_s10  }
 0x1b2   :  { %339 = dma.done.wait [#allocation4], 256  }
 0x1b3   :  { %340 = vsyncadd [#allocation4], 4294967040 }
 0x1b4   :  { %209 = vsyncpa [#allocation3], 1 }
 0x1b5   :  { %210 = vsyncpa [#allocation6], 1 }
 0x1b6   :  { %211 = vsyncpa [#allocation4], 1 }

</bundles_post_ra>
